<compile_context>
chip_gen: v7x
topology: tpu7x:2x2x1
jax: 0.10.0
libtpu: 0.0.40
codegen_flags: <defaults>
</compile_context>

<pallas_src>
import functools

import jax
import jax.numpy as jnp
from jax import lax
from jax.experimental import pallas as pl
from jax.experimental.pallas import tpu as pltpu

EPS = 1e-5          # nn.BatchNorm1d default eps
_LANE = 128
_SUBLANE = 8


def _round_up(n, m):
    return ((n + m - 1) // m) * m


# ---------------------------------------------------------------------------
# Shared pieces
# ---------------------------------------------------------------------------
def _accumulate_tile(x_ref, acc_ref, *, tile, hw, step_axis, needs_mask):
    """Lane-dense accumulation of one (rows, tile) block into (rows, 128).

    tile//128 statically-unrolled 128-lane-aligned VPU adds; the optional edge
    mask (columns >= HW) uses a select (not multiply) so undefined data in the
    clipped region of a partial edge block can never poison the sum.
    """
    t = pl.program_id(step_axis)
    x = x_ref[...].astype(jnp.float32)            # f32 accumulation (bf16 inputs ok)
    if needs_mask:                                # static: only when HW % tile != 0
        col = lax.broadcasted_iota(jnp.int32, x.shape, 1) + t * tile
        x = jnp.where(col < hw, x, 0.0)
    for j in range(tile // _LANE):                # static unroll, VALU slot only
        acc_ref[...] += x[:, j * _LANE:(j + 1) * _LANE]


def _selector_tail(o1, gamma, beta, w_a, b_a, w_b, b_b, out_ref):
    """BatchNorm1d (train-mode batch stats) -> ReLU -> selectors -> softmax."""
    # TODO(synk): BatchNorm1d running-mean/var buffer updates (stateful) are not
    # replicated; forward math matches torch train-mode batch statistics.
    mu = jnp.mean(o1, axis=0, keepdims=True)
    var = jnp.mean((o1 - mu) ** 2, axis=0, keepdims=True)
    o1 = (o1 - mu) * lax.rsqrt(var + EPS) * gamma + beta
    o1 = jnp.maximum(o1, 0.0)

    a = jnp.dot(o1, w_a, preferred_element_type=jnp.float32) + b_a
    b = jnp.dot(o1, w_b, preferred_element_type=jnp.float32) + b_b

    # softmax over the (virtual) concat [a, b] along dim=1; torch keeps
    # v[:, 0] and v[:, 1] — with out_channels >= 2 both come from `a`.
    m = jnp.maximum(jnp.max(a, axis=1, keepdims=True),
                    jnp.max(b, axis=1, keepdims=True))
    ea = jnp.exp(a - m)
    eb = jnp.exp(b - m)
    inv = 1.0 / (jnp.sum(ea, axis=1, keepdims=True)
                 + jnp.sum(eb, axis=1, keepdims=True))
    out_channels = a.shape[1]                     # static at trace time
    col0 = ea[:, 0:1]
    col1 = ea[:, 1:2] if out_channels >= 2 else eb[:, 0:1]
    out_ref[:, 0:1] = col0 * inv                  # direct slice stores, no concat
    out_ref[:, 1:2] = col1 * inv


# ---------------------------------------------------------------------------
# Fused kernel: spatial-sum reduction + full epilogue in the last grid step.
# ---------------------------------------------------------------------------
def fused_selector_kernel(x_ref, w_e_rep_ref, b_e_ref, g_ref, beta_ref,
                          w_a_ref, b_a_ref, w_b_ref, b_b_ref,
                          out_ref, acc_ref,
                          *, tile, hw, inv_hw, n_batch, channels, needs_mask):
    t = pl.program_id(0)

    @pl.when(t == 0)
    def _():
        acc_ref[...] = jnp.zeros_like(acc_ref)

    _accumulate_tile(x_ref, acc_ref, tile=tile, hw=hw, step_axis=0,
                     needs_mask=needs_mask)

    @pl.when(t == pl.num_programs(0) - 1)
    def _():
        # Single cross-lane (XLU) reduce, once per call.
        s_col = jnp.sum(acc_ref[...], axis=-1, keepdims=True) * inv_hw  # (NC, 1)

        # Embedding Linear without an in-kernel (NC,1)->(N,C) relayout:
        #   o1[n, :] = sum_c vec[n, c] * w_e[c, :]
        #            = G(N,NC) @ (s_col * tile(w_e, N))
        nc = n_batch * channels
        rows = lax.broadcasted_iota(jnp.int32, (n_batch, nc), 0)
        cols = lax.broadcasted_iota(jnp.int32, (n_batch, nc), 1)
        gsel = ((cols >= rows * channels) &
                (cols < rows * channels + channels)).astype(jnp.float32)
        o1 = jnp.dot(gsel, s_col * w_e_rep_ref[...],
                     preferred_element_type=jnp.float32) + b_e_ref[...]

        _selector_tail(o1, g_ref[...], beta_ref[...],
                       w_a_ref[...], b_a_ref[...], w_b_ref[...], b_b_ref[...],
                       out_ref)


# ---------------------------------------------------------------------------
# Row-tiled reduction kernel (large N*C): output block is the accumulator.
# ---------------------------------------------------------------------------
def spatial_partial_sum_kernel(x_ref, acc_ref, *, tile, hw, needs_mask):
    t = pl.program_id(1)

    @pl.when(t == 0)
    def _():
        acc_ref[...] = jnp.zeros_like(acc_ref)

    _accumulate_tile(x_ref, acc_ref, tile=tile, hw=hw, step_axis=1,
                     needs_mask=needs_mask)


# ---------------------------------------------------------------------------
# Standalone tail kernel (only used on the row-tiled path).
# ---------------------------------------------------------------------------
def selector_tail_kernel(vec_ref, w_e_ref, b_e_ref, g_ref, beta_ref,
                         w_a_ref, b_a_ref, w_b_ref, b_b_ref, out_ref,
                         *, inv_hw):
    vector = vec_ref[...] * inv_hw                           # (N, C) spatial mean
    o1 = jnp.dot(vector, w_e_ref[...],
                 preferred_element_type=jnp.float32) + b_e_ref[...]
    _selector_tail(o1, g_ref[...], beta_ref[...], w_a_ref[...], b_a_ref[...],
                   w_b_ref[...], b_b_ref[...], out_ref)


# ---------------------------------------------------------------------------
# Parameters (PyTorch Linear init; BN gamma=1, beta=0)
# ---------------------------------------------------------------------------
def init_params(key, in_channels, intermediate_channels, out_channels):
    k = jax.random.split(key, 6)

    def lin(kw, kb, fan_in, fan_out):
        bound = 1.0 / jnp.sqrt(float(fan_in))
        w = jax.random.uniform(kw, (fan_in, fan_out), jnp.float32, -bound, bound)
        b = jax.random.uniform(kb, (1, fan_out), jnp.float32, -bound, bound)
        return w, b

    w_e, b_e = lin(k[0], k[1], in_channels, intermediate_channels)
    gamma = jnp.ones((1, intermediate_channels), jnp.float32)
    beta = jnp.zeros((1, intermediate_channels), jnp.float32)
    w_a, b_a = lin(k[2], k[3], intermediate_channels, out_channels)
    w_b, b_b = lin(k[4], k[5], intermediate_channels, out_channels)
    return (w_e, b_e, gamma, beta, w_a, b_a, w_b, b_b)


# ---------------------------------------------------------------------------
# Forward wrapper
# ---------------------------------------------------------------------------
def size_selector_forward(x, params, *, lane_tile=1024, row_tile=256,
                          max_fused_rows=1024,
                          vmem_limit_bytes=32 * 1024 * 1024):
    """x: (N, C, H, W) -> (a, b), each (N, 1, 1, 1) float32.

    lane_tile: ~1024 is safe on every generation (v7x has only 64 MiB physical
    VMEM; v6e/v5e could go 2048 but gain <2%).  vmem_limit stays at 32 MiB.
    """
    w_e, b_e, g, beta, w_a, b_a, w_b, b_b = params
    N, C, H, W = x.shape
    HW = H * W
    NC = N * C

    # Lane-dense layout, metadata-only reshape.  Input dtype preserved (bf16
    # halves HBM traffic of the only HBM-heavy pass); accumulation is f32.
    x_flat = x.reshape(NC, HW)
    itemsize = x_flat.dtype.itemsize

    fused = NC <= max_fused_rows
    rows_block = NC if fused else min(row_tile, _round_up(NC, _SUBLANE))

    # (8,128)-aligned lane tile, clamped so 2 pipeline buffers of the x block
    # stay well under the (v7x-safe) 32 MiB scoped VMEM limit.
    budget = vmem_limit_bytes // 2
    max_tile = max(_LANE, (budget // (2 * rows_block * itemsize)) // _LANE * _LANE)
    tile = min(lane_tile, _round_up(HW, _LANE), max_tile)
    tile = max(_LANE, (tile // _LANE) * _LANE)
    num_tiles = pl.cdiv(HW, tile)
    needs_mask = (HW % tile) != 0       # in-kernel edge mask; no wrapper jnp.pad

    if fused:
        # Single pallas_call: reduction + epilogue fused into the last step.
        w_e_rep = jnp.tile(w_e, (N, 1))     # (NC, M); avoids in-kernel relayout
        weight_args = (w_e_rep, b_e, g, beta, w_a, b_a, w_b, b_b)
        out2 = pl.pallas_call(
            functools.partial(fused_selector_kernel, tile=tile, hw=HW,
                              inv_hw=1.0 / float(HW), n_batch=N, channels=C,
                              needs_mask=needs_mask),
            out_shape=jax.ShapeDtypeStruct((N, 2), jnp.float32),
            grid=(num_tiles,),
            in_specs=[pl.BlockSpec((NC, tile), lambda t: (0, t))] +
                     [pl.BlockSpec(w.shape, lambda t: (0, 0))
                      for w in weight_args],
            out_specs=pl.BlockSpec((N, 2), lambda t: (0, 0)),
            scratch_shapes=[pltpu.VMEM((NC, _LANE), jnp.float32)],
            compiler_params=pltpu.CompilerParams(
                dimension_semantics=("arbitrary",),
                vmem_limit_bytes=vmem_limit_bytes),
        )(x_flat, *weight_args)
    else:
        # Row-tiled reduction ("parallel" NC axis lets v7x's 2 TCs split it),
        # lane-dense (NC, 128) partial sums, then a tiny separate tail kernel.
        partials = pl.pallas_call(
            functools.partial(spatial_partial_sum_kernel, tile=tile, hw=HW,
                              needs_mask=needs_mask),
            out_shape=jax.ShapeDtypeStruct((NC, _LANE), jnp.float32),
            grid=(pl.cdiv(NC, rows_block), num_tiles),
            in_specs=[pl.BlockSpec((rows_block, tile), lambda r, t: (r, t))],
            out_specs=pl.BlockSpec((rows_block, _LANE), lambda r, t: (r, 0)),
            compiler_params=pltpu.CompilerParams(
                dimension_semantics=("parallel", "arbitrary"),
                vmem_limit_bytes=vmem_limit_bytes),
        )(x_flat)
        vec = jnp.sum(partials, axis=-1).reshape(N, C)   # tiny XLA glue
        vmem = pl.BlockSpec(memory_space=pltpu.MemorySpace.VMEM)
        out2 = pl.pallas_call(
            functools.partial(selector_tail_kernel, inv_hw=1.0 / float(HW)),
            out_shape=jax.ShapeDtypeStruct((N, 2), jnp.float32),
            in_specs=[vmem] * 9,
            out_specs=vmem,
        )(vec, w_e, b_e, g, beta, w_a, b_a, w_b, b_b)

    a = out2[:, 0].reshape(N, 1, 1, 1)
    b = out2[:, 1].reshape(N, 1, 1, 1)
    return a, b


# ---------------------------------------------------------------------------
# Pure-JAX reference (mirrors the PyTorch module exactly)
# ---------------------------------------------------------------------------
def _reference(x, params):
    w_e, b_e, g, beta, w_a, b_a, w_b, b_b = params
    vector = x.mean(-1).mean(-1)
    o1 = vector @ w_e + b_e
    mu = o1.mean(0, keepdims=True)
    var = ((o1 - mu) ** 2).mean(0, keepdims=True)
    o1 = (o1 - mu) / jnp.sqrt(var + EPS) * g + beta
    o1 = jnp.maximum(o1, 0.0)
    a = o1 @ w_a + b_a
    b = o1 @ w_b + b_b
    v = jax.nn.softmax(jnp.concatenate([a, b], axis=1), axis=1)
    return v[:, 0].reshape(-1, 1, 1, 1), v[:, 1].reshape(-1, 1, 1, 1)


if __name__ == "__main__":
    key = jax.random.PRNGKey(0)
    kx, kp, kx2, kx3 = jax.random.split(key, 4)

    N, C, H, W = 2, 4, 16, 16
    intermediate_channels, out_channels = 32, 8
    params = init_params(kp, C, intermediate_channels, out_channels)

    # Case 1: canonical small shape (fused path, HW a multiple of the tile).
    x = jax.random.normal(kx, (N, C, H, W), jnp.float32)
    a, b = size_selector_forward(x, params)
    jax.block_until_ready((a, b))
    a_ref, b_ref = _reference(x, params)
    assert a.shape == (N, 1, 1, 1) and b.shape == (N, 1, 1, 1)
    assert jnp.allclose(a, a_ref, atol=1e-5), (a, a_ref)
    assert jnp.allclose(b, b_ref, atol=1e-5), (b, b_ref)

    # Case 2: fused path with HW not a multiple of 128 — exercises the
    # in-kernel edge mask (which replaced the wrapper-side jnp.pad).
    x2 = jax.random.normal(kx2, (2, 4, 10, 10), jnp.float32)
    a2, b2 = size_selector_forward(x2, params)
    jax.block_until_ready((a2, b2))
    a2_ref, b2_ref = _reference(x2, params)
    assert jnp.allclose(a2, a2_ref, atol=1e-5), (a2, a2_ref)
    assert jnp.allclose(b2, b2_ref, atol=1e-5), (b2, b2_ref)

    # Case 3: force the row-tiled ("parallel" NC axis) + separate-tail path.
    x3 = jax.random.normal(kx3, (4, 4, 12, 12), jnp.float32)
    a3, b3 = size_selector_forward(x3, params, max_fused_rows=8)
    jax.block_until_ready((a3, b3))
    a3_ref, b3_ref = _reference(x3, params)
    assert jnp.allclose(a3, a3_ref, atol=1e-5), (a3, a3_ref)
    assert jnp.allclose(b3, b3_ref, atol=1e-5), (b3, b3_ref)

    print("KERNEL_OK")
</pallas_src>

<mosaic_0001>
module attributes {stable_mosaic.version = 11 : i64} {
  func.func @fused_selector_kernel(%arg0: i32, %arg1: memref<8x256xf32, #tpu.memory_space<vmem>>, %arg2: memref<8x32xf32, #tpu.memory_space<vmem>>, %arg3: memref<1x32xf32, #tpu.memory_space<vmem>>, %arg4: memref<1x32xf32, #tpu.memory_space<vmem>>, %arg5: memref<1x32xf32, #tpu.memory_space<vmem>>, %arg6: memref<32x8xf32, #tpu.memory_space<vmem>>, %arg7: memref<1x8xf32, #tpu.memory_space<vmem>>, %arg8: memref<32x8xf32, #tpu.memory_space<vmem>>, %arg9: memref<1x8xf32, #tpu.memory_space<vmem>>, %arg10: memref<2x2xf32, #tpu.memory_space<vmem>>, %arg11: memref<8x128xf32, #tpu.memory_space<vmem>>) attributes {dimension_semantics = [#tpu.dimension_semantics<arbitrary>], iteration_bounds = array<i64: 1>, scalar_prefetch = 0 : i64, scratch_operands = 1 : i64, tpu.core_type = #tpu.core_type<tc>, window_params = [{transform_indices = @transform_0, window_bounds = array<i64: 8, 256>}, {pipeline_mode = #tpu.pipeline_mode<synchronous>, transform_indices = @transform_1, window_bounds = array<i64: 8, 32>}, {pipeline_mode = #tpu.pipeline_mode<synchronous>, transform_indices = @transform_2, window_bounds = array<i64: 1, 32>}, {pipeline_mode = #tpu.pipeline_mode<synchronous>, transform_indices = @transform_3, window_bounds = array<i64: 1, 32>}, {pipeline_mode = #tpu.pipeline_mode<synchronous>, transform_indices = @transform_4, window_bounds = array<i64: 1, 32>}, {pipeline_mode = #tpu.pipeline_mode<synchronous>, transform_indices = @transform_5, window_bounds = array<i64: 32, 8>}, {pipeline_mode = #tpu.pipeline_mode<synchronous>, transform_indices = @transform_6, window_bounds = array<i64: 1, 8>}, {pipeline_mode = #tpu.pipeline_mode<synchronous>, transform_indices = @transform_7, window_bounds = array<i64: 32, 8>}, {pipeline_mode = #tpu.pipeline_mode<synchronous>, transform_indices = @transform_8, window_bounds = array<i64: 1, 8>}, {pipeline_mode = #tpu.pipeline_mode<synchronous>, transform_indices = @transform_9, window_bounds = array<i64: 2, 2>}]} {
    %c0_i32 = arith.constant 0 : i32
    %0 = arith.cmpi eq, %arg0, %c0_i32 : i32
    %1 = arith.extui %0 : i1 to i32
    %c0_i32_0 = arith.constant 0 : i32
    %2 = arith.cmpi ne, %1, %c0_i32_0 : i32
    scf.if %2 {
      %cst = arith.constant 0.000000e+00 : f32
      %15 = vector.broadcast %cst : f32 to vector<8x128xf32>
      %c0_12 = arith.constant 0 : index
      %c0_13 = arith.constant 0 : index
      %16 = vector.load %arg11[%c0_12, %c0_13] : memref<8x128xf32, #tpu.memory_space<vmem>>, vector<8x128xf32>
      tpu.vector_store %arg11[%c0_12, %c0_13], %15 {strides = array<i32>} : memref<8x128xf32, #tpu.memory_space<vmem>>, vector<8x128xf32>,
    } else {
    }
    %c0 = arith.constant 0 : index
    %c0_1 = arith.constant 0 : index
    %3 = vector.load %arg1[%c0, %c0_1] : memref<8x256xf32, #tpu.memory_space<vmem>>, vector<8x256xf32>
    %c0_2 = arith.constant 0 : index
    %c0_3 = arith.constant 0 : index
    %4 = vector.load %arg11[%c0_2, %c0_3] : memref<8x128xf32, #tpu.memory_space<vmem>>, vector<8x128xf32>
    %5 = vector.extract_strided_slice %3 {offsets = [0, 0], sizes = [8, 128], strides = [1, 1]} : vector<8x256xf32> to vector<8x128xf32>
    %6 = arith.addf %4, %5 : vector<8x128xf32>
    %c0_4 = arith.constant 0 : index
    %c0_5 = arith.constant 0 : index
    %7 = vector.load %arg11[%c0_4, %c0_5] : memref<8x128xf32, #tpu.memory_space<vmem>>, vector<8x128xf32>
    tpu.vector_store %arg11[%c0_4, %c0_5], %6 {strides = array<i32>} : memref<8x128xf32, #tpu.memory_space<vmem>>, vector<8x128xf32>,
    %c0_6 = arith.constant 0 : index
    %c0_7 = arith.constant 0 : index
    %8 = vector.load %arg11[%c0_6, %c0_7] : memref<8x128xf32, #tpu.memory_space<vmem>>, vector<8x128xf32>
    %9 = vector.extract_strided_slice %3 {offsets = [0, 128], sizes = [8, 128], strides = [1, 1]} : vector<8x256xf32> to vector<8x128xf32>
    %10 = arith.addf %8, %9 : vector<8x128xf32>
    %c0_8 = arith.constant 0 : index
    %c0_9 = arith.constant 0 : index
    %11 = vector.load %arg11[%c0_8, %c0_9] : memref<8x128xf32, #tpu.memory_space<vmem>>, vector<8x128xf32>
    tpu.vector_store %arg11[%c0_8, %c0_9], %10 {strides = array<i32>} : memref<8x128xf32, #tpu.memory_space<vmem>>, vector<8x128xf32>,
    %c0_i32_10 = arith.constant 0 : i32
    %12 = arith.cmpi eq, %arg0, %c0_i32_10 : i32
    %13 = arith.extui %12 : i1 to i32
    %c0_i32_11 = arith.constant 0 : i32
    %14 = arith.cmpi ne, %13, %c0_i32_11 : i32
    scf.if %14 {
      %c0_12 = arith.constant 0 : index
      %c0_13 = arith.constant 0 : index
      %15 = vector.load %arg11[%c0_12, %c0_13] : memref<8x128xf32, #tpu.memory_space<vmem>>, vector<8x128xf32>
      %cst = arith.constant dense<0.000000e+00> : vector<8xf32>
      %16 = vector.multi_reduction <add>, %15, %cst [1] : vector<8x128xf32> to vector<8xf32>
      %17 = vector.shape_cast %16 : vector<8xf32> to vector<8x1xf32>
      %cst_14 = arith.constant 3.906250e-03 : f32
      %18 = vector.broadcast %cst_14 : f32 to vector<8x1xf32>
      %19 = arith.mulf %17, %18 : vector<8x1xf32>
      %20 = tpu.iota {dimensions = array<i32: 0>} : vector<2x8xi32>
      %21 = tpu.iota {dimensions = array<i32: 1>} : vector<2x8xi32>
      %c4_i32 = arith.constant 4 : i32
      %22 = vector.broadcast %c4_i32 : i32 to vector<2x8xi32>
      %23 = arith.muli %20, %22 : vector<2x8xi32>
      %24 = arith.cmpi sge, %21, %23 : vector<2x8xi32>
      %c4_i32_15 = arith.constant 4 : i32
      %25 = vector.broadcast %c4_i32_15 : i32 to vector<2x8xi32>
      %26 = arith.muli %20, %25 : vector<2x8xi32>
      %c4_i32_16 = arith.constant 4 : i32
      %27 = vector.broadcast %c4_i32_16 : i32 to vector<2x8xi32>
      %28 = arith.addi %26, %27 : vector<2x8xi32>
      %29 = arith.cmpi slt, %21, %28 : vector<2x8xi32>
      %30 = arith.andi %24, %29 : vector<2x8xi1>
      %31 = arith.extui %30 : vector<2x8xi1> to vector<2x8xi32>
      %32 = arith.sitofp %31 : vector<2x8xi32> to vector<2x8xf32>
      %c0_17 = arith.constant 0 : index
      %c0_18 = arith.constant 0 : index
      %33 = vector.load %arg2[%c0_17, %c0_18] : memref<8x32xf32, #tpu.memory_space<vmem>>, vector<8x32xf32>
      %34 = vector.broadcast %19 : vector<8x1xf32> to vector<8x32xf32>
      %35 = arith.mulf %34, %33 : vector<8x32xf32>
      %cst_19 = arith.constant dense<0.000000e+00> : vector<2x32xf32>
      %36 = tpu.matmul %32, %35, %cst_19 {dimension_numbers = #tpu.dot_dimension_numbers<[1], [0], [0], [1], [0, 0, 1, 1], [], []>} : vector<2x8xf32>, vector<8x32xf32>, vector<2x32xf32> -> vector<2x32xf32>
      %c0_20 = arith.constant 0 : index
      %c0_21 = arith.constant 0 : index
      %37 = vector.load %arg3[%c0_20, %c0_21] : memref<1x32xf32, #tpu.memory_space<vmem>>, vector<1x32xf32>
      %38 = vector.broadcast %37 : vector<1x32xf32> to vector<2x32xf32>
      %39 = arith.addf %36, %38 : vector<2x32xf32>
      %c0_22 = arith.constant 0 : index
      %c0_23 = arith.constant 0 : index
      %40 = vector.load %arg4[%c0_22, %c0_23] : memref<1x32xf32, #tpu.memory_space<vmem>>, vector<1x32xf32>
      %c0_24 = arith.constant 0 : index
      %c0_25 = arith.constant 0 : index
      %41 = vector.load %arg5[%c0_24, %c0_25] : memref<1x32xf32, #tpu.memory_space<vmem>>, vector<1x32xf32>
      %c0_26 = arith.constant 0 : index
      %c0_27 = arith.constant 0 : index
      %42 = vector.load %arg6[%c0_26, %c0_27] : memref<32x8xf32, #tpu.memory_space<vmem>>, vector<32x8xf32>
      %c0_28 = arith.constant 0 : index
      %c0_29 = arith.constant 0 : index
      %43 = vector.load %arg7[%c0_28, %c0_29] : memref<1x8xf32, #tpu.memory_space<vmem>>, vector<1x8xf32>
      %c0_30 = arith.constant 0 : index
      %c0_31 = arith.constant 0 : index
      %44 = vector.load %arg8[%c0_30, %c0_31] : memref<32x8xf32, #tpu.memory_space<vmem>>, vector<32x8xf32>
      %c0_32 = arith.constant 0 : index
      %c0_33 = arith.constant 0 : index
      %45 = vector.load %arg9[%c0_32, %c0_33] : memref<1x8xf32, #tpu.memory_space<vmem>>, vector<1x8xf32>
      %cst_34 = arith.constant dense<0.000000e+00> : vector<32xf32>
      %46 = vector.multi_reduction <add>, %39, %cst_34 [0] : vector<2x32xf32> to vector<32xf32>
      %47 = vector.shape_cast %46 : vector<32xf32> to vector<1x32xf32>
      %cst_35 = arith.constant 2.000000e+00 : f32
      %48 = vector.broadcast %cst_35 : f32 to vector<1x32xf32>
      %49 = arith.divf %47, %48 : vector<1x32xf32>
      %50 = vector.broadcast %49 : vector<1x32xf32> to vector<2x32xf32>
      %51 = arith.subf %39, %50 : vector<2x32xf32>
      %52 = arith.mulf %51, %51 : vector<2x32xf32>
      %cst_36 = arith.constant dense<0.000000e+00> : vector<32xf32>
      %53 = vector.multi_reduction <add>, %52, %cst_36 [0] : vector<2x32xf32> to vector<32xf32>
      %54 = vector.shape_cast %53 : vector<32xf32> to vector<1x32xf32>
      %cst_37 = arith.constant 2.000000e+00 : f32
      %55 = vector.broadcast %cst_37 : f32 to vector<1x32xf32>
      %56 = arith.divf %54, %55 : vector<1x32xf32>
      %57 = vector.broadcast %49 : vector<1x32xf32> to vector<2x32xf32>
      %58 = arith.subf %39, %57 : vector<2x32xf32>
      %cst_38 = arith.constant 9.99999974E-6 : f32
      %59 = vector.broadcast %cst_38 : f32 to vector<1x32xf32>
      %60 = arith.addf %56, %59 : vector<1x32xf32>
      %61 = math.rsqrt %60 : vector<1x32xf32>
      %62 = vector.broadcast %61 : vector<1x32xf32> to vector<2x32xf32>
      %63 = arith.mulf %58, %62 : vector<2x32xf32>
      %64 = vector.broadcast %40 : vector<1x32xf32> to vector<2x32xf32>
      %65 = arith.mulf %63, %64 : vector<2x32xf32>
      %66 = vector.broadcast %41 : vector<1x32xf32> to vector<2x32xf32>
      %67 = arith.addf %65, %66 : vector<2x32xf32>
      %cst_39 = arith.constant 0.000000e+00 : f32
      %68 = vector.broadcast %cst_39 : f32 to vector<2x32xf32>
      %69 = arith.maximumf %67, %68 : vector<2x32xf32>
      %cst_40 = arith.constant dense<0.000000e+00> : vector<2x8xf32>
      %70 = tpu.matmul %69, %42, %cst_40 {dimension_numbers = #tpu.dot_dimension_numbers<[1], [0], [0], [1], [0, 0, 1, 1], [], []>} : vector<2x32xf32>, vector<32x8xf32>, vector<2x8xf32> -> vector<2x8xf32>
      %71 = vector.broadcast %43 : vector<1x8xf32> to vector<2x8xf32>
      %72 = arith.addf %70, %71 : vector<2x8xf32>
      %cst_41 = arith.constant dense<0.000000e+00> : vector<2x8xf32>
      %73 = tpu.matmul %69, %44, %cst_41 {dimension_numbers = #tpu.dot_dimension_numbers<[1], [0], [0], [1], [0, 0, 1, 1], [], []>} : vector<2x32xf32>, vector<32x8xf32>, vector<2x8xf32> -> vector<2x8xf32>
      %74 = vector.broadcast %45 : vector<1x8xf32> to vector<2x8xf32>
      %75 = arith.addf %73, %74 : vector<2x8xf32>
      %cst_42 = arith.constant dense<0xFF800000> : vector<2xf32>
      %76 = vector.multi_reduction <maximumf>, %72, %cst_42 [1] : vector<2x8xf32> to vector<2xf32>
      %77 = vector.shape_cast %76 : vector<2xf32> to vector<2x1xf32>
      %cst_43 = arith.constant dense<0xFF800000> : vector<2xf32>
      %78 = vector.multi_reduction <maximumf>, %75, %cst_43 [1] : vector<2x8xf32> to vector<2xf32>
      %79 = vector.shape_cast %78 : vector<2xf32> to vector<2x1xf32>
      %80 = arith.maximumf %77, %79 : vector<2x1xf32>
      %81 = vector.broadcast %80 : vector<2x1xf32> to vector<2x8xf32>
      %82 = arith.subf %72, %81 : vector<2x8xf32>
      %83 = math.exp %82 : vector<2x8xf32>
      %84 = vector.broadcast %80 : vector<2x1xf32> to vector<2x8xf32>
      %85 = arith.subf %75, %84 : vector<2x8xf32>
      %86 = math.exp %85 : vector<2x8xf32>
      %cst_44 = arith.constant dense<0.000000e+00> : vector<2xf32>
      %87 = vector.multi_reduction <add>, %83, %cst_44 [1] : vector<2x8xf32> to vector<2xf32>
      %88 = vector.shape_cast %87 : vector<2xf32> to vector<2x1xf32>
      %cst_45 = arith.constant dense<0.000000e+00> : vector<2xf32>
      %89 = vector.multi_reduction <add>, %86, %cst_45 [1] : vector<2x8xf32> to vector<2xf32>
      %90 = vector.shape_cast %89 : vector<2xf32> to vector<2x1xf32>
      %91 = arith.addf %88, %90 : vector<2x1xf32>
      %cst_46 = arith.constant 1.000000e+00 : f32
      %92 = vector.broadcast %cst_46 : f32 to vector<2x1xf32>
      %93 = arith.divf %92, %91 : vector<2x1xf32>
      %94 = vector.extract_strided_slice %83 {offsets = [0, 0], sizes = [2, 1], strides = [1, 1]} : vector<2x8xf32> to vector<2x1xf32>
      %95 = vector.extract_strided_slice %83 {offsets = [0, 1], sizes = [2, 1], strides = [1, 1]} : vector<2x8xf32> to vector<2x1xf32>
      %96 = arith.mulf %94, %93 : vector<2x1xf32>
      %c0_47 = arith.constant 0 : index
      %c0_48 = arith.constant 0 : index
      %97 = vector.load %arg10[%c0_47, %c0_48] : memref<2x2xf32, #tpu.memory_space<vmem>>, vector<2x1xf32>
      tpu.vector_store %arg10[%c0_47, %c0_48], %96 {strides = array<i32>} : memref<2x2xf32, #tpu.memory_space<vmem>>, vector<2x1xf32>,
      %98 = arith.mulf %95, %93 : vector<2x1xf32>
      %c0_49 = arith.constant 0 : index
      %c1 = arith.constant 1 : index
      %99 = vector.load %arg10[%c0_49, %c1] : memref<2x2xf32, #tpu.memory_space<vmem>>, vector<2x1xf32>
      tpu.vector_store %arg10[%c0_49, %c1], %98 {strides = array<i32>} : memref<2x2xf32, #tpu.memory_space<vmem>>, vector<2x1xf32>,
    } else {
    }
    return
  }
  func.func @transform_0(%arg0: i32) -> (i32, i32) {
    %c0_i32 = arith.constant 0 : i32
    %c0_i32_0 = arith.constant 0 : i32
    return %c0_i32, %arg0 : i32, i32
  }
  func.func @transform_1(%arg0: i32) -> (i32, i32) {
    %c0_i32 = arith.constant 0 : i32
    %c0_i32_0 = arith.constant 0 : i32
    %c0_i32_1 = arith.constant 0 : i32
    return %c0_i32, %c0_i32_0 : i32, i32
  }
  func.func @transform_2(%arg0: i32) -> (i32, i32) {
    %c0_i32 = arith.constant 0 : i32
    %c0_i32_0 = arith.constant 0 : i32
    %c0_i32_1 = arith.constant 0 : i32
    return %c0_i32, %c0_i32_0 : i32, i32
  }
  func.func @transform_3(%arg0: i32) -> (i32, i32) {
    %c0_i32 = arith.constant 0 : i32
    %c0_i32_0 = arith.constant 0 : i32
    %c0_i32_1 = arith.constant 0 : i32
    return %c0_i32, %c0_i32_0 : i32, i32
  }
  func.func @transform_4(%arg0: i32) -> (i32, i32) {
    %c0_i32 = arith.constant 0 : i32
    %c0_i32_0 = arith.constant 0 : i32
    %c0_i32_1 = arith.constant 0 : i32
    return %c0_i32, %c0_i32_0 : i32, i32
  }
  func.func @transform_5(%arg0: i32) -> (i32, i32) {
    %c0_i32 = arith.constant 0 : i32
    %c0_i32_0 = arith.constant 0 : i32
    %c0_i32_1 = arith.constant 0 : i32
    return %c0_i32, %c0_i32_0 : i32, i32
  }
  func.func @transform_6(%arg0: i32) -> (i32, i32) {
    %c0_i32 = arith.constant 0 : i32
    %c0_i32_0 = arith.constant 0 : i32
    %c0_i32_1 = arith.constant 0 : i32
    return %c0_i32, %c0_i32_0 : i32, i32
  }
  func.func @transform_7(%arg0: i32) -> (i32, i32) {
    %c0_i32 = arith.constant 0 : i32
    %c0_i32_0 = arith.constant 0 : i32
    %c0_i32_1 = arith.constant 0 : i32
    return %c0_i32, %c0_i32_0 : i32, i32
  }
  func.func @transform_8(%arg0: i32) -> (i32, i32) {
    %c0_i32 = arith.constant 0 : i32
    %c0_i32_0 = arith.constant 0 : i32
    %c0_i32_1 = arith.constant 0 : i32
    return %c0_i32, %c0_i32_0 : i32, i32
  }
  func.func @transform_9(%arg0: i32) -> (i32, i32) {
    %c0_i32 = arith.constant 0 : i32
    %c0_i32_0 = arith.constant 0 : i32
    %c0_i32_1 = arith.constant 0 : i32
    return %c0_i32, %c0_i32_0 : i32, i32
  }
}

</mosaic_0001>

<bundles_post_ra>
// kernel: tpu_custom_call.1
= control target key start
LH: loop header
LB: loop body
LE: loop exit
PB: predicated region body
PF: predicated region fallthrough
CT: control target
= control target key end

     0   :  { %s612_s0 = inlined_call_operand.vmem [shape: f32[8,256], index: 0, kind: input, shape index: {}]   ;;  %s613_s1 = inlined_call_operand.vmem [shape: f32[8,32], index: 1, kind: input, shape index: {}]   ;;  %s614_s2 = inlined_call_operand.vmem [shape: f32[1,32], index: 2, kind: input, shape index: {}]   ;;  %s615_s3 = inlined_call_operand.vmem [shape: f32[1,32], index: 3, kind: input, shape index: {}]   ;;  %s616_s4 = inlined_call_operand.vmem [shape: f32[1,32], index: 4, kind: input, shape index: {}]   ;;  %s617_s5 = inlined_call_operand.vmem [shape: f32[32,8], index: 5, kind: input, shape index: {}]   ;;  %s618_s6 = inlined_call_operand.vmem [shape: f32[1,8], index: 6, kind: input, shape index: {}]   ;;  %s619_s7 = inlined_call_operand.vmem [shape: f32[32,8], index: 7, kind: input, shape index: {}]   ;;  %s620_s8 = inlined_call_operand.vmem [shape: f32[1,8], index: 8, kind: input, shape index: {}]   ;;  %s621_s9 = inlined_call_operand.hbm [shape: f32[2,2], index: 9, kind: output, shape index: {}]  }
   0x1   :  { %v38_v0 = vld [vmem:[%s612_s0] sm:$0xff]  ;;  %v39_v1 = vld [vmem:[%s612_s0 + $0x8] sm:$0xff] }
   0x2   :  { %14 = vsyncpa [#allocation4], 0  ;;  %v44_v2 = vadd.f32 %v39_v1, %v38_v0  ;;  %v491_v3 = vmov 0.0   ;;  %vm492_vm0 = vmmov 0   ;;  %v53_v4 = vlaneseq  ;;  %v64_v10 = vld [vmem:[%s613_s1] sm:$0xff]  ;;  %v150_v15 = vld [vmem:[%s617_s5 + $0x8] sm:$0xff] }
   0x3   :  { %416 = vmatprep.subr.mxu0 %v491_v3  ;;  %418 = vmatprep.mubr.msk.f32.mxu0 %vm492_vm0, %v491_v3  ;;  %vm73_vm4 = vcmask 64512   ;;  %v149_v14 = vld [vmem:[%s617_s5] sm:$0xff]  ;;  %v155_v18 = vld [vmem:[%s619_s7 + $0x8] sm:$0xff]  ;;  %v493_v19 = vmov 0.0|0.0   ;;  %v151_v21 = vld [vmem:[%s617_s5 + $0x10] sm:$0xff]  ;;  %vm159_vm5 = vcmask 254976  }
   0x4   :  { %50 = vadd.xlane.f32.xlu0 %v44_v2  ;;  %429 = vmatprep.mubr.msk.f32.mxu1 %vm492_vm0, %v491_v3  ;;  %v54_v5 = vshrl.u32 %v53_v4, 7  ;;  %v56_v7 = vand.u32 127, %v53_v4  ;;  %v154_v16 = vld [vmem:[%s619_s7] sm:$0xff]  ;;  %v444_v17 = vpack.c.bf16 %v150_v15, %v149_v14  ;;  %v152_v22 = vld [vmem:[%s617_s5 + $0x18] sm:$0xff]  ;;  %v156_v23 = vld [vmem:[%s619_s7 + $0x10] sm:$0xff]  ;;  %vm203_vm6 = vcmask 261120  }
   0x5   :  { %443 = vmatprep.subr.bf16.mxu1 %v493_v19  ;;  %v450_v20 = vpack.c.bf16 %v155_v18, %v154_v16  ;;  %v447_v24 = vpack.c.bf16 %v152_v22, %v151_v21  ;;  %v157_v25 = vld [vmem:[%s619_s7 + $0x18] sm:$0xff]  ;;  %v396_v27 = vld [vmem:[%s614_s2] ss:$0 sm:$0xff]  ;;  %vm353_vm7 = vcmask 58368   ;;  %vm377_vm8 = vcmask 1024  }
   0x6   :  { %v57_v6 = vmul.u32 4, %v54_v5  ;;  %445 = vmatpush3.bf16.msra.mxu1 %v444_v17  ;;  %v453_v26 = vpack.c.bf16 %v157_v25, %v156_v23  ;;  %v398_v51 = vld [vmem:[%s615_s3] ss:$0 sm:$0xff]  ;;  %s494_s3 = smov [#allocation3]   ;;  %vm379_vm9 = vcmask 9224  }
   0x7   :  { %446 = vmatprep.subr.bf16.mxu1 %v493_v19  ;;  %v399_v53 = vld [vmem:[%s616_s4] ss:$0 sm:$0xff]  ;;  %s387_s4 = sshll.u32 %s494_s3, 4  ;;  %s388_s4 = int_to_ptr.vmem [resolvable:$true] %s387_s4 }
   0x8   :  { %v59_v8 = vadd.s32 4, %v57_v6  ;;  %vm58_vm1 = vcmp.ge.s32.totalorder %v56_v7, %v57_v6  ;;  %v400_v57 = vld [vmem:[%s618_s6] ss:$0 sm:$0xff]  ;;  %s467_s6 = scalar_lea.vmem %s388_s4, 32  ;;  %p472_p1 = scmp.lt.s32.totalorder %s388_s4, %s388_s4 }
   0x9   :  { %v402_v58 = vld [vmem:[%s620_s8] ss:$0 sm:$0xff]  ;;  %p468_p0 = scmp.ne.s32.totalorder %s388_s4, %s467_s6  ;;  %p473_p2 = scmp.lt.s32.totalorder %s467_s6, %s467_s6 }
   0xa   :  { %vm60_vm2 = vcmp.lt.s32.totalorder %v56_v7, %v59_v8  ;;  %448 = vmatpush3.bf16.msra.mxu1 %v447_v24 }
   0xb   :  { %vm61_vm3 = vmand %vm58_vm1, %vm60_vm2  ;;  %p474_p3 = por %p473_p2, %p472_p1 }
   0xc   :  { %v395_v13 = vsel %vm61_vm3, 1.0, %v491_v3 }
   0xd   :  { %p475_p4 = pnand %p474_p3, %p468_p0 }
  0x91   :  { %v51_v9 = vpop.xlane.xlu0 %50 }
  0x92   :  { %v52_v11 = vmul.f32 0.00390625, %v51_v9 }
  0x94   :  { %v65_v12 = vmul.f32 %v64_v10, %v52_v11 }
  0x96   :  { %417 = vmatpush3.msra.mxu0 %v65_v12 }
  0x97   :  { %419 = vmatmul.mubr.msk.f32.vlgmr.msra.gmra.mrb[0].mxu0 %vm73_vm4, %v395_v13  ;;  %449 = vmatprep.subr.bf16.mxu0 %v493_v19 }
  0x98   :  { %440 = vmatprep.mubr.msk.f32.mxu0 %vm492_vm0, %v491_v3  ;;  %451 = vmatpush3.bf16.msra.mxu0 %v450_v20 }
  0x99   :  { %452 = vmatprep.subr.bf16.mxu0 %v493_v19 }
  0x9c   :  { %454 = vmatpush3.bf16.msra.mxu0 %v453_v26 }
 0x16a   :  { %v143_v28 = vpop.f32.mrb[0].mxu0 }
 0x16b   :  { %v144_v29 = vadd.f32 %v396_v27, %v143_v28  ;;  %v420_v30 = vpop.f32.mrb[1].mxu0 }
 0x16d   :  { %v160_v31 = vsel %vm159_vm5, %v144_v29, 0.0 }
 0x16e   :  { %v161_v32 = vrot.slane %v160_v31, 4 }
 0x170   :  { %v162_v33 = vadd.f32 %v161_v32, %v160_v31 }
 0x172   :  { %v163_v34 = vrot.slane %v162_v33, 2 }
 0x174   :  { %v164_v35 = vadd.f32 %v163_v34, %v162_v33 }
 0x176   :  { %v165_v36 = vrot.slane %v164_v35, 1 }
 0x178   :  { %v166_v37 = vadd.f32 %v165_v36, %v164_v35 }
 0x17a   :  { %v168_v38 = vmul.f32 0.5, %v166_v37 }
 0x17c   :  { %v169_v39 = vsub.f32 %v144_v29, %v168_v38 }
 0x17e   :  { %v170_v40 = vmul.f32 %v169_v39, %v169_v39 }
 0x180   :  { %v171_v41 = vsel %vm159_vm5, %v170_v40, 0.0 }
 0x181   :  { %v172_v42 = vrot.slane %v171_v41, 4 }
 0x183   :  { %v173_v43 = vadd.f32 %v172_v42, %v171_v41 }
 0x185   :  { %v174_v44 = vrot.slane %v173_v43, 2 }
 0x187   :  { %v175_v45 = vadd.f32 %v174_v44, %v173_v43 }
 0x189   :  { %v176_v46 = vrot.slane %v175_v45, 1 }
 0x18b   :  { %v177_v47 = vadd.f32 %v176_v46, %v175_v45 }
 0x18d   :  { %v178_v48 = vmul.f32 0.5, %v177_v47 }
 0x18f   :  { %v179_v49 = vadd.f32 1e-05, %v178_v48 }
 0x191   :  { %459 = vrsqrt.f32 %v179_v49 }
 0x19b   :  { %v460_v50 = vpop.eup %459 }
 0x19c   :  { %v181_v52 = vmul.f32 %v460_v50, %v169_v39 }
 0x19e   :  { %v188_v54 = vmul.f32 %v398_v51, %v181_v52 }
 0x1a0   :  { %v195_v55 = vadd.f32 %v399_v53, %v188_v54 }
 0x1a2   :  { %v196_v56 = vmax.f32 %v195_v55, 0.0 }
 0x1a4   :  { %430 = vmatmul.mubr.msk.f32.vlgmr.msra.gmra.mrb[0].mxu1 %vm203_vm6, %v196_v56  ;;  %441 = vmatmul.mubr.msk.f32.vlgmr.msra.gmra.mrb[2].mxu0 %vm203_vm6, %v196_v56 }
 0x277   :  { %v273_v59 = vpop.f32.mrb[0].mxu1  ;;  %v349_v60 = vpop.f32.mrb[2].mxu0 }
 0x278   :  { %v274_v61 = vadd.f32 %v400_v57, %v273_v59  ;;  %v350_v62 = vadd.f32 %v402_v58, %v349_v60  ;;  %v431_v63 = vpop.f32.mrb[1].mxu1  ;;  %v442_v0 = vpop.f32.mrb[3].mxu0 }
 0x27a   :  { %v354_v1 = vsel %vm353_vm7, %v274_v61, -inf  ;;  %v357_v2 = vsel %vm353_vm7, %v350_v62, -inf }
 0x27b   :  { %355 = vmax.xlane.f32.xlu0 %v354_v1  ;;  %358 = vmax.xlane.f32.xlu1 %v357_v2 }
 0x308   :  { %v356_v3 = vpop.xlane.xlu0 %355  ;;  %v359_v4 = vpop.xlane.xlu1 %358 }
 0x309   :  { %v360_v5 = vmax.f32 %v356_v3, %v359_v4 }
 0x30b   :  { %v361_v6 = vsub.f32 %v274_v61, %v360_v5  ;;  %v364_v7 = vsub.f32 %v350_v62, %v360_v5 }
 0x30d   :  { %v362_v8 = vmul.f32 1.442695, %v361_v6  ;;  %v365_v9 = vmul.f32 1.442695, %v364_v7 }
 0x30f   :  { %461 = vpow2.f32 %v362_v8 }
 0x310   :  { %463 = vpow2.f32 %v365_v9 }
 0x319   :  { %v462_v10 = vpop.eup %461 }
 0x31a   :  { %v464_v11 = vpop.eup %463  ;;  %v367_v12 = vsel %vm353_vm7, %v462_v10, 0.0 }
 0x31b   :  { %v370_v13 = vsel %vm353_vm7, %v464_v11, 0.0  ;;  %368 = vadd.xlane.f32.xlu1 %v367_v12 }
 0x31c   :  { %371 = vadd.xlane.f32.xlu0 %v370_v13 }
 0x3a8   :  { %v369_v14 = vpop.xlane.xlu1 %368 }
 0x3a9   :  { %v372_v15 = vpop.xlane.xlu0 %371 }
 0x3aa   :  { %v373_v16 = vadd.f32 %v372_v15, %v369_v14 }
 0x3ac   :  { %465 = vrcp.f32 %v373_v16 }
 0x3b6   :  { %v466_v17 = vpop.eup %465 }
 0x3b7   :  { %v376_v18 = vmul.f32 %v466_v17, %v462_v10 }
 0x3b9   :  { %378 = vst.msk [vmem:[#allocation3] sm:$0x3] %vm377_vm8, %v376_v18 }
 0x3ba   :  { %380 = vst.msk [vmem:[#allocation3] sm:$0x3] %vm379_vm9, %v376_v18 }
 0x3bb   :  { %478 = shalt.err (!%p475_p4)
}
 0x3bc   :  { %s479_s15 = scalar_lea.hbm %s621_s9, 32 }
 0x3bd   :  { %p480_p5 = scmp.ne.s32.totalorder %s621_s9, %s479_s15  ;;  %p483_p6 = scmp.lt.u32.totalorder %s479_s15, %s621_s9 }
 0x3bf   :  { %p485_p7 = pnand %p483_p6, %p480_p5 }
 0x3c1   :  { %488 = shalt.err (!%p485_p7)
}
 0x3c2   :  { %390 = dma.vmem_to_hbm [thread:$0]  %s388_s4, 32, %s621_s9, [#allocation4]  }
 0x3c3   :  { %489 = dma.done.wait [#allocation4], 32  }
 0x3c4   :  { %490 = vsyncadd [#allocation4], 4294967264 }
 0x3c5   :  { %394 = vsyncpa [#allocation4], 1 }

</bundles_post_ra>
